<compile_context>
chip_gen: v7x
topology: tpu7x:2x2x1
jax: 0.10.0
libtpu: 0.0.40
codegen_flags: <defaults>
</compile_context>

<pallas_src>
import functools

import jax
import jax.numpy as jnp
from jax import lax
from jax.experimental import pallas as pl
from jax.experimental.pallas import tpu as pltpu

LANES = 128
SUBLANES = 8
ALIGN = SUBLANES * LANES                # 1024 elements = one f32 vreg tile
CHUNK_ROWS = 512                        # in-kernel accumulation chunk (256 KiB f32)
TARGET_BLOCK_BYTES = 4 * 1024 * 1024    # ~4 MiB per input per grid step


def _masked_l1_partial_kernel(x_ref, y_ref, out_ref, *,
                              total_rows, tile_rows, chunk_rows, num_chunks,
                              ragged):
    """Per-block partial reduction.

    out_ref is (16, 128) f32: rows 0:8 hold the partial |x - y| sum, rows
    8:16 hold the partial mask count, each folded onto one (8, 128) slab.
    """
    i = pl.program_id(0)

    def run(apply_row_mask):
        def body(c, carry):
            s, cnt = carry
            r0 = pl.multiple_of(c * chunk_rows, chunk_rows)
            # Cast in-kernel: reads native dtype from HBM, computes in f32
            # (v5e-safe: no bf16 VPU needed).
            x = x_ref[pl.ds(r0, chunk_rows), :].astype(jnp.float32)
            y = y_ref[pl.ds(r0, chunk_rows), :].astype(jnp.float32)
            m = (x != jnp.float32(0)) & (y != jnp.float32(0))
            if apply_row_mask:
                # Only the ragged last grid block pays for this: drop the rows
                # Pallas padded with unspecified data past `total_rows`.
                rid = lax.broadcasted_iota(jnp.int32, (chunk_rows, LANES), 0)
                m &= (rid + (i * tile_rows + r0)) < total_rows
            d = jnp.where(m, jnp.abs(x - y), jnp.float32(0))
            mf = m.astype(jnp.float32)
            s = s + d.reshape(chunk_rows // SUBLANES, SUBLANES, LANES).sum(axis=0)
            cnt = cnt + mf.reshape(chunk_rows // SUBLANES, SUBLANES, LANES).sum(axis=0)
            return s, cnt

        zero = jnp.zeros((SUBLANES, LANES), jnp.float32)
        s, cnt = lax.fori_loop(0, num_chunks, body, (zero, zero),
                               unroll=2 if num_chunks >= 2 else 1)
        out_ref[0:SUBLANES, :] = s
        out_ref[SUBLANES:2 * SUBLANES, :] = cnt

    if ragged:
        last = pl.num_programs(0) - 1

        @pl.when(i != last)
        def _():
            run(False)

        @pl.when(i == last)
        def _():
            run(True)
    else:
        run(False)


def masked_l1_loss(inputs, targets):
    assert inputs.shape == targets.shape
    x = inputs.reshape(-1)
    y = targets.reshape(-1)
    n = x.shape[0]

    # Align the flat length to one vreg tile (8 * 128) so the lane-dense 2-D
    # view is legal. No-op for typical NCHW tensors; any zeros added here are
    # excluded by the (x != 0) & (y != 0) mask.
    # TODO(synk): when n % 1024 != 0 this pad materializes a full copy of both
    # inputs; an element-granular in-kernel tail would avoid it.
    n_pad = pl.cdiv(n, ALIGN) * ALIGN
    if n_pad != n:
        x = jnp.pad(x, (0, n_pad - n))
        y = jnp.pad(y, (0, n_pad - n))

    rows = n_pad // LANES
    itemsize = jnp.dtype(inputs.dtype).itemsize

    if rows <= CHUNK_ROWS:
        tile_rows = rows
        chunk_rows = rows
    else:
        chunk_rows = CHUNK_ROWS
        # ~4 MiB per input block, dtype-aware, multiple of the chunk size.
        target = max(CHUNK_ROWS,
                     (TARGET_BLOCK_BYTES // (LANES * itemsize))
                     // CHUNK_ROWS * CHUNK_ROWS)
        # Keep >= 2 grid steps so the "parallel" axis can shard across both
        # v7x TensorCores.
        half = pl.cdiv(pl.cdiv(rows, 2), CHUNK_ROWS) * CHUNK_ROWS
        tile_rows = min(target, half)

    num_blocks = pl.cdiv(rows, tile_rows)
    num_chunks = tile_rows // chunk_rows
    ragged = (rows % tile_rows) != 0

    x2 = x.reshape(rows, LANES)
    y2 = y.reshape(rows, LANES)

    kernel = functools.partial(
        _masked_l1_partial_kernel,
        total_rows=rows, tile_rows=tile_rows, chunk_rows=chunk_rows,
        num_chunks=num_chunks, ragged=ragged)

    # 2 inputs x 2 pipeline buffers x block; bump the scoped-VMEM limit so the
    # 4 MiB blocks fit on v5e's 16 MiB default (physical VMEM >= 64 MiB).
    block_bytes = tile_rows * LANES * itemsize
    vmem_limit = int(min(64 << 20, max(32 << 20, 4 * block_bytes + (2 << 20))))

    out_bytes = num_blocks * 2 * SUBLANES * LANES * 4
    cost = pl.CostEstimate(
        flops=6 * n_pad,
        transcendentals=0,
        bytes_accessed=2 * n_pad * itemsize + out_bytes)

    out = pl.pallas_call(
        kernel,
        out_shape=jax.ShapeDtypeStruct((num_blocks * 2 * SUBLANES, LANES),
                                       jnp.float32),
        grid_spec=pltpu.PrefetchScalarGridSpec(
            num_scalar_prefetch=0,
            grid=(num_blocks,),
            in_specs=[
                pl.BlockSpec((tile_rows, LANES), lambda i: (i, 0)),
                pl.BlockSpec((tile_rows, LANES), lambda i: (i, 0)),
            ],
            out_specs=pl.BlockSpec((2 * SUBLANES, LANES), lambda i: (i, 0)),
        ),
        compiler_params=pltpu.CompilerParams(
            dimension_semantics=("parallel",),
            vmem_limit_bytes=vmem_limit,
        ),
        cost_estimate=cost,
    )(x2, y2)

    parts = out.reshape(num_blocks, 2, SUBLANES, LANES)
    total_sum = jnp.sum(parts[:, 0])
    # Per-block counts are exact in f32 (<= tile_rows * 128 < 2^24); fold each
    # block to a scalar, then accumulate exactly in int32 (exact up to ~2.1e9
    # masked elements).
    cnt_per_block = jnp.sum(parts[:, 1], axis=(1, 2)).astype(jnp.int32)
    total_cnt = jnp.sum(cnt_per_block)
    # 0 / 0 -> NaN matches torch .mean() over an empty masked selection.
    return total_sum / total_cnt.astype(jnp.float32)


def _reference(inputs, targets):
    mask = (inputs != 0) & (targets != 0)
    diff = jnp.abs(inputs - targets)
    return jnp.sum(jnp.where(mask, diff, 0.0)) / jnp.sum(mask.astype(jnp.float32))


if __name__ == "__main__":
    key = jax.random.PRNGKey(0)

    def make_inputs(k, shape):
        k1, k2, k3, k4 = jax.random.split(k, 4)
        a = jax.random.normal(k1, shape, dtype=jnp.float32)
        b = jax.random.normal(k2, shape, dtype=jnp.float32)
        # Introduce exact zeros so the mask actually drops elements.
        a = jnp.where(jax.random.bernoulli(k3, p=0.2, shape=shape), 0.0, a)
        b = jnp.where(jax.random.bernoulli(k4, p=0.2, shape=shape), 0.0, b)
        return a, b

    ka, kb = jax.random.split(key)

    # Primary case: small NCHW tensor (single aligned block).
    x1, y1 = make_inputs(ka, (2, 4, 16, 16))
    out1 = masked_l1_loss(x1, y1)
    jax.block_until_ready(out1)
    ref1 = _reference(x1, y1)
    assert jnp.allclose(out1, ref1, rtol=1e-5, atol=1e-5), (out1, ref1)

    # Secondary case: unaligned size -> pad path + multi-block grid + ragged
    # last block (exercises the pl.when-gated tail mask).
    x2, y2 = make_inputs(kb, (2, 3, 64, 300))
    out2 = masked_l1_loss(x2, y2)
    jax.block_until_ready(out2)
    ref2 = _reference(x2, y2)
    assert jnp.allclose(out2, ref2, rtol=1e-5, atol=1e-5), (out2, ref2)

    print("KERNEL_OK")
</pallas_src>

<mosaic_0001>
module attributes {stable_mosaic.version = 11 : i64} {
  func.func @_masked_l1_partial_kernel(%arg0: i32, %arg1: memref<16x128xf32, #tpu.memory_space<vmem>>, %arg2: memref<16x128xf32, #tpu.memory_space<vmem>>, %arg3: memref<16x128xf32, #tpu.memory_space<vmem>>) attributes {dimension_semantics = [#tpu.dimension_semantics<parallel>], iteration_bounds = array<i64: 1>, scalar_prefetch = 0 : i64, scratch_operands = 0 : i64, tpu.core_type = #tpu.core_type<tc>, window_params = [{transform_indices = @transform_0, window_bounds = array<i64: 16, 128>}, {transform_indices = @transform_1, window_bounds = array<i64: 16, 128>}, {transform_indices = @transform_2, window_bounds = array<i64: 16, 128>}]} {
    %cst = arith.constant 0.000000e+00 : f32
    %0 = vector.broadcast %cst : f32 to vector<8x128xf32>
    %c0_i32 = arith.constant 0 : i32
    %c16_i32 = arith.constant 16 : i32
    %1 = arith.muli %c0_i32, %c16_i32 : i32
    %2 = tpu.assume_multiple %1, 16 : i32
    %3 = arith.index_cast %2 : i32 to index
    %c0 = arith.constant 0 : index
    %4 = vector.load %arg1[%3, %c0] : memref<16x128xf32, #tpu.memory_space<vmem>>, vector<16x128xf32>
    %5 = arith.index_cast %2 : i32 to index
    %c0_0 = arith.constant 0 : index
    %6 = vector.load %arg2[%5, %c0_0] : memref<16x128xf32, #tpu.memory_space<vmem>>, vector<16x128xf32>
    %cst_1 = arith.constant 0.000000e+00 : f32
    %7 = vector.broadcast %cst_1 : f32 to vector<16x128xf32>
    %8 = arith.cmpf one, %4, %7 : vector<16x128xf32>
    %cst_2 = arith.constant 0.000000e+00 : f32
    %9 = vector.broadcast %cst_2 : f32 to vector<16x128xf32>
    %10 = arith.cmpf one, %6, %9 : vector<16x128xf32>
    %11 = arith.andi %8, %10 : vector<16x128xi1>
    %12 = arith.subf %4, %6 : vector<16x128xf32>
    %13 = math.absf %12 : vector<16x128xf32>
    %cst_3 = arith.constant 0.000000e+00 : f32
    %14 = vector.broadcast %cst_3 : f32 to vector<16x128xf32>
    %15 = arith.select %11, %13, %14 : vector<16x128xi1>, vector<16x128xf32>
    %16 = arith.extui %11 : vector<16x128xi1> to vector<16x128xi32>
    %17 = arith.sitofp %16 : vector<16x128xi32> to vector<16x128xf32>
    %18 = vector.shape_cast %15 : vector<16x128xf32> to vector<2x8x128xf32>
    %cst_4 = arith.constant dense<0.000000e+00> : vector<8x128xf32>
    %19 = vector.multi_reduction <add>, %18, %cst_4 [0] : vector<2x8x128xf32> to vector<8x128xf32>
    %20 = arith.addf %0, %19 : vector<8x128xf32>
    %21 = vector.shape_cast %17 : vector<16x128xf32> to vector<2x8x128xf32>
    %cst_5 = arith.constant dense<0.000000e+00> : vector<8x128xf32>
    %22 = vector.multi_reduction <add>, %21, %cst_5 [0] : vector<2x8x128xf32> to vector<8x128xf32>
    %23 = arith.addf %0, %22 : vector<8x128xf32>
    %c1_i32 = arith.constant 1 : i32
    %c0_6 = arith.constant 0 : index
    %c0_7 = arith.constant 0 : index
    %24 = vector.load %arg3[%c0_6, %c0_7] : memref<16x128xf32, #tpu.memory_space<vmem>>, vector<8x128xf32>
    tpu.vector_store %arg3[%c0_6, %c0_7], %20 {strides = array<i32>} : memref<16x128xf32, #tpu.memory_space<vmem>>, vector<8x128xf32>,
    %c8 = arith.constant 8 : index
    %c0_8 = arith.constant 0 : index
    %25 = vector.load %arg3[%c8, %c0_8] : memref<16x128xf32, #tpu.memory_space<vmem>>, vector<8x128xf32>
    tpu.vector_store %arg3[%c8, %c0_8], %23 {strides = array<i32>} : memref<16x128xf32, #tpu.memory_space<vmem>>, vector<8x128xf32>,
    return
  }
  func.func @transform_0(%arg0: i32) -> (i32, i32) {
    %c0_i32 = arith.constant 0 : i32
    %c0_i32_0 = arith.constant 0 : i32
    return %arg0, %c0_i32 : i32, i32
  }
  func.func @transform_1(%arg0: i32) -> (i32, i32) {
    %c0_i32 = arith.constant 0 : i32
    %c0_i32_0 = arith.constant 0 : i32
    return %arg0, %c0_i32 : i32, i32
  }
  func.func @transform_2(%arg0: i32) -> (i32, i32) {
    %c0_i32 = arith.constant 0 : i32
    %c0_i32_0 = arith.constant 0 : i32
    return %arg0, %c0_i32 : i32, i32
  }
}

</mosaic_0001>

<bundles_post_ra>
// kernel: tpu_custom_call.1
= control target key start
LH: loop header
LB: loop body
LE: loop exit
PB: predicated region body
PF: predicated region fallthrough
CT: control target
= control target key end

     0   :  { %7 = vsyncpa [#allocation3], 0  ;;  %s230_s0 = inlined_call_operand.hbm [shape: f32[16,128], index: 0, kind: input, shape index: {}]   ;;  %s231_s1 = inlined_call_operand.hbm [shape: f32[16,128], index: 1, kind: input, shape index: {}]   ;;  %s232_s2 = inlined_call_operand.hbm [shape: f32[16,128], index: 2, kind: output, shape index: {}]  }
   0x1   :  { %8 = vsyncpa [#allocation6], 0 }
   0x2   :  { %9 = vsyncpa [#allocation4], 0  ;;  %s164_s9 = smov [#allocation2]   ;;  %s92_s13 = scalar_lea.hbm %s230_s0, 256 }
   0x3   :  { %s15_s10 = sshll.u32 %s164_s9, 4  ;;  %p93_p0 = scmp.ne.s32.totalorder %s230_s0, %s92_s13  ;;  %s16_s10 = int_to_ptr.vmem [resolvable:$true] %s15_s10 }
   0x4   :  { %p96_p1 = scmp.lt.u32.totalorder %s92_s13, %s230_s0 }
   0x6   :  { %p98_p2 = pnand %p96_p1, %p93_p0 }
   0x8   :  { %101 = shalt.err (!%p98_p2)
}
   0x9   :  { %s102_s18 = scalar_lea.vmem %s16_s10, 256  ;;  %p107_p4 = scmp.lt.s32.totalorder %s16_s10, %s16_s10 }
   0xa   :  { %p103_p3 = scmp.ne.s32.totalorder %s16_s10, %s102_s18  ;;  %p108_p5 = scmp.lt.s32.totalorder %s102_s18, %s102_s18 }
   0xc   :  { %p109_p6 = por %p108_p5, %p107_p4 }
   0xe   :  { %p110_p7 = pnand %p109_p6, %p103_p3 }
  0x10   :  { %113 = shalt.err (!%p110_p7)
}
  0x11   :  { %s165_s19 = smov 128   ;;  %s166_s20 = smov 8  }
  0x12   :  { %21 = dma.hbm_to_vmem [thread:$0]  %s230_s0, 256, %s16_s10, [#allocation3], %s165_s19, %s165_s19, %s166_s20  }
  0x13   :  { %s167_s23 = smov [#allocation5]   ;;  %s114_s27 = scalar_lea.hbm %s231_s1, 256 }
  0x14   :  { %s27_s24 = sshll.u32 %s167_s23, 4  ;;  %p115_p8 = scmp.ne.s32.totalorder %s231_s1, %s114_s27  ;;  %s28_s24 = int_to_ptr.vmem [resolvable:$true] %s27_s24 }
  0x15   :  { %p118_p9 = scmp.lt.u32.totalorder %s114_s27, %s231_s1 }
  0x17   :  { %p120_p10 = pnand %p118_p9, %p115_p8 }
  0x19   :  { %123 = shalt.err (!%p120_p10)
}
  0x1a   :  { %s124_s4 = scalar_lea.vmem %s28_s24, 256  ;;  %p129_p12 = scmp.lt.s32.totalorder %s28_s24, %s28_s24 }
  0x1b   :  { %p125_p11 = scmp.ne.s32.totalorder %s28_s24, %s124_s4  ;;  %p130_p13 = scmp.lt.s32.totalorder %s124_s4, %s124_s4 }
  0x1d   :  { %p131_p0 = por %p130_p13, %p129_p12 }
  0x1f   :  { %p132_p1 = pnand %p131_p0, %p125_p11 }
  0x21   :  { %135 = shalt.err (!%p132_p1)
}
  0x22   :  { %33 = dma.hbm_to_vmem [thread:$0]  %s231_s1, 256, %s28_s24, [#allocation6], %s165_s19, %s165_s19, %s166_s20  }
  0x23   :  { %158 = dma.done.wait [#allocation3], 256  }
  0x24   :  { %159 = vsyncadd [#allocation3], 4294967040 }
  0x25   :  { %160 = dma.done.wait [#allocation6], 256  }
  0x26   :  { %161 = vsyncadd [#allocation6], 4294967040  ;;  %v40_v0 = vld [vmem:[#allocation2] sm:$0xff]  ;;  %v41_v1 = vld [vmem:[#allocation2 + $0x8] sm:$0xff]  ;;  %v168_v7 = vmov 0.0   ;;  %s169_s1 = smov [#allocation7]  }
  0x27   :  { %v42_v2 = vld [vmem:[#allocation5] sm:$0xff]  ;;  %v43_v3 = vld [vmem:[#allocation5 + $0x8] sm:$0xff]  ;;  %vm44_vm0 = vcmp.ne.f32.partialorder %v40_v0, 0.0  ;;  %vm45_vm1 = vcmp.ne.f32.partialorder %v41_v1, 0.0  ;;  %s71_s6 = sshll.u32 %s169_s1, 4  ;;  %s72_s6 = int_to_ptr.vmem [resolvable:$true] %s71_s6 }
  0x28   :  { %vm46_vm2 = vcmp.ne.f32.partialorder %v42_v2, 0.0  ;;  %v50_v4 = vsub.f32 %v40_v0, %v42_v2  ;;  %vm47_vm3 = vcmp.ne.f32.partialorder %v43_v3, 0.0  ;;  %v51_v5 = vsub.f32 %v41_v1, %v43_v3  ;;  %s136_s7 = scalar_lea.vmem %s72_s6, 256  ;;  %p141_p3 = scmp.lt.s32.totalorder %s72_s6, %s72_s6 }
  0x29   :  { %vm48_vm4 = vmand %vm44_vm0, %vm46_vm2  ;;  %p137_p2 = scmp.ne.s32.totalorder %s72_s6, %s136_s7  ;;  %p142_p4 = scmp.lt.s32.totalorder %s136_s7, %s136_s7 }
  0x2a   :  { %vm49_vm5 = vmand %vm45_vm1, %vm47_vm3  ;;  %v52_v6 = vand.u32 2147483647, %v50_v4  ;;  %v84_v8 = vsel %vm48_vm4, 1.0, %v168_v7  ;;  %v53_v9 = vand.u32 2147483647, %v51_v5 }
  0x2b   :  { %v85_v10 = vsel %vm49_vm5, 1.0, %v168_v7  ;;  %p143_p5 = por %p142_p4, %p141_p3 }
  0x2c   :  { %v54_v11 = vsel %vm48_vm4, %v52_v6, 0.0  ;;  %v62_v12 = vadd.f32 %v85_v10, %v84_v8  ;;  %v55_v13 = vsel %vm49_vm5, %v53_v9, 0.0 }
  0x2d   :  { %v60_v14 = vadd.f32 %v55_v13, %v54_v11  ;;  %p144_p6 = pnand %p143_p5, %p137_p2 }
  0x2e   :  { %65 = vst [vmem:[#allocation7 + $0x8] sm:$0xff] %v62_v12 }
  0x2f   :  { %64 = vst [vmem:[#allocation7] sm:$0xff] %v60_v14 }
  0x30   :  { %147 = shalt.err (!%p144_p6)
}
  0x31   :  { %s148_s10 = scalar_lea.hbm %s232_s2, 256 }
  0x32   :  { %p149_p7 = scmp.ne.s32.totalorder %s232_s2, %s148_s10  ;;  %p152_p8 = scmp.lt.u32.totalorder %s148_s10, %s232_s2 }
  0x34   :  { %p154_p9 = pnand %p152_p8, %p149_p7 }
  0x36   :  { %157 = shalt.err (!%p154_p9)
}
  0x37   :  { %77 = dma.vmem_to_hbm [thread:$0]  %s72_s6, 256, %s232_s2, [#allocation4], %s165_s19, %s165_s19, %s166_s20  }
  0x38   :  { %162 = dma.done.wait [#allocation4], 256  }
  0x39   :  { %163 = vsyncadd [#allocation4], 4294967040 }
  0x3a   :  { %81 = vsyncpa [#allocation3], 1 }
  0x3b   :  { %82 = vsyncpa [#allocation6], 1 }
  0x3c   :  { %83 = vsyncpa [#allocation4], 1 }

</bundles_post_ra>
